<compile_context>
chip_gen: v7x
topology: tpu7x:2x2x1
jax: 0.10.0
libtpu: 0.0.40
codegen_flags: <defaults>
</compile_context>

<pallas_src>
from math import gcd

import jax
import jax.numpy as jnp
from jax.experimental import pallas as pl
from jax.experimental.pallas import tpu as pltpu


def mlp_packed_kernel(x_ref, w1_ref, b1_ref, w2_ref, b2_ref, o_ref):
    # x tile streams through HBM->VMEM; the (kron'd) weights/biases stay
    # VMEM-resident across the whole grid (constant index_map).
    x = x_ref[...]                                                    # (tbp, P*D_in)
    h = jnp.dot(x, w1_ref[...], preferred_element_type=jnp.float32)  # MXU
    h = h + b1_ref[...]                                               # VPU broadcast add
    h = jnp.where(h > 0, h, 0.01 * h)                                 # LeakyReLU (VPU)
    h = h.astype(w2_ref.dtype)                                        # no-op on f32 path
    y = jnp.dot(h, w2_ref[...], preferred_element_type=jnp.float32)  # MXU
    y = y + b2_ref[...]
    o_ref[...] = jax.nn.sigmoid(y)                                    # EUP exp + VPU


def _round_up(n, m):
    return ((n + m - 1) // m) * m


def base_model_forward(x, w1, b1, w2, b2, *, stream_bf16=False,
                       target_x_bytes_per_step=1 << 20):
    B, D_in = x.shape
    D_out = w2.shape[1]
    b1 = jnp.asarray(b1).reshape(1, D_in)
    b2 = jnp.asarray(b2).reshape(1, D_out)

    # Row-packing factor: P batch rows per VMEM row, chosen so the packed
    # output row (P*D_out) fills the 128 lanes (capped to bound pad waste).
    P = max(1, min(128 // gcd(128, D_out), 32))

    # Pad B to a multiple of P only (at most P-1 = 15 zero rows, not to the tile).
    B_pad = _round_up(B, P)
    if B_pad != B:
        x = jnp.pad(x, ((0, B_pad - B), (0, 0)))
    Np = B_pad // P                                        # packed rows

    in_dtype = jnp.bfloat16 if stream_bf16 else x.dtype
    x_packed = x.reshape(Np, P * D_in).astype(in_dtype)    # free row-major view (+opt cast)

    # Block-diagonal weights / tiled biases: identical math on the packed layout.
    eye = jnp.eye(P, dtype=jnp.float32)
    w1_big = jnp.kron(eye, w1.astype(jnp.float32)).astype(in_dtype)  # (P*D_in, P*D_in)
    w2_big = jnp.kron(eye, w2.astype(jnp.float32)).astype(in_dtype)  # (P*D_in, P*D_out)
    b1_big = jnp.tile(b1.astype(jnp.float32), (1, P))                # (1, P*D_in)
    b2_big = jnp.tile(b2.astype(jnp.float32), (1, P))                # (1, P*D_out)

    cin, cout = P * D_in, P * D_out

    # Tile the packed-row axis: ~target bytes of x per step, >= 2 steps when
    # possible (v7x megacore), last block nearly full, sublane-aligned.
    itemsize = jnp.dtype(in_dtype).itemsize
    row_bytes = cin * itemsize
    target_rows = max(8, target_x_bytes_per_step // row_bytes)
    n_steps = max(2, pl.cdiv(Np, target_rows))
    tbp = _round_up(pl.cdiv(Np, n_steps), 8)
    if tbp >= Np:
        tbp, n_steps = Np, 1           # single block (block dim == full array dim)
    else:
        n_steps = pl.cdiv(Np, tbp)

    # VMEM budget from actual (lane-dense) block sizes, with 2x headroom.
    vmem_est = (2 * tbp * cin * itemsize                    # x double buffer
                + 2 * tbp * cout * 4                        # out double buffer
                + 2 * (cin * cin + cin * cout) * itemsize   # resident weights (x2 buffers)
                + 2 * (cin + cout) * 4                      # biases
                + 3 * tbp * cin * 4)                        # h / y / temporaries (f32)
    vmem_limit = int(min(max(2 * vmem_est, 8 << 20), 32 << 20))

    out_packed = pl.pallas_call(
        mlp_packed_kernel,
        out_shape=jax.ShapeDtypeStruct((Np, cout), jnp.float32),
        grid=(n_steps,),
        in_specs=[
            # Streamed activations: one lane-dense tile per grid step.
            pl.BlockSpec((tbp, cin), lambda i: (i, 0)),
            # Weights/biases: constant block index -> fetched once, VMEM-resident.
            pl.BlockSpec((cin, cin), lambda i: (0, 0)),
            pl.BlockSpec((1, cin), lambda i: (0, 0)),
            pl.BlockSpec((cin, cout), lambda i: (0, 0)),
            pl.BlockSpec((1, cout), lambda i: (0, 0)),
        ],
        out_specs=pl.BlockSpec((tbp, cout), lambda i: (i, 0)),
        compiler_params=pltpu.CompilerParams(
            # No state crosses the batch axis -> parallel (v7x: shard over 2 TCs).
            dimension_semantics=("parallel",),
            vmem_limit_bytes=vmem_limit,
        ),
    )(x_packed, w1_big, b1_big, w2_big, b2_big)

    out = out_packed.reshape(B_pad, D_out)    # free view back to row-major (B_pad, D_out)
    return out[:B] if B_pad != B else out


def reference_forward(x, w1, b1, w2, b2):
    h = x @ w1 + b1
    h = jnp.where(h > 0, h, 0.01 * h)
    y = h @ w2 + b2
    return jax.nn.sigmoid(y)


if __name__ == "__main__":
    key = jax.random.PRNGKey(0)
    D_in, D_out = 32, 8
    k_w1, k_b1, k_w2, k_b2, k_x1, k_x2, k_x3 = jax.random.split(key, 7)

    # Deterministic init matching PyTorch nn.Linear defaults: U(-1/sqrt(fan_in), +).
    lim = 1.0 / jnp.sqrt(jnp.float32(D_in))
    w1 = jax.random.uniform(k_w1, (D_in, D_in), jnp.float32, -lim, lim)
    b1 = jax.random.uniform(k_b1, (1, D_in), jnp.float32, -lim, lim)
    w2 = jax.random.uniform(k_w2, (D_in, D_out), jnp.float32, -lim, lim)
    b2 = jax.random.uniform(k_b2, (1, D_out), jnp.float32, -lim, lim)

    # Case 1: small batch, B % 16 == 0 -> single block, no padding anywhere.
    B1 = 128
    x1 = jax.random.normal(k_x1, (B1, D_in), dtype=jnp.float32)
    out1 = jax.block_until_ready(base_model_forward(x1, w1, b1, w2, b2))
    ref1 = reference_forward(x1, w1, b1, w2, b2)
    assert out1.shape == (B1, D_out)
    assert jnp.allclose(out1, ref1, atol=1e-5, rtol=1e-5), "mismatch (B=128, f32)"

    # Case 2: B not a multiple of 16 -> pads 4 rows, 2 grid steps, partial last
    # block handled by masked writeback.
    B2 = 300
    x2 = jax.random.normal(k_x2, (B2, D_in), dtype=jnp.float32)
    out2 = jax.block_until_ready(base_model_forward(x2, w1, b1, w2, b2))
    ref2 = reference_forward(x2, w1, b1, w2, b2)
    assert out2.shape == (B2, D_out)
    assert jnp.allclose(out2, ref2, atol=1e-5, rtol=1e-5), "mismatch (B=300, f32)"

    # Case 3: optional bf16 streaming path (f32 accumulation), 2-step grid.
    B3 = 256
    x3 = jax.random.normal(k_x3, (B3, D_in), dtype=jnp.float32)
    out3 = jax.block_until_ready(
        base_model_forward(x3, w1, b1, w2, b2, stream_bf16=True))
    ref3 = reference_forward(x3, w1, b1, w2, b2)
    assert out3.shape == (B3, D_out)
    assert jnp.allclose(out3, ref3, atol=2e-2, rtol=2e-2), "mismatch (B=256, bf16)"

    print("KERNEL_OK")
</pallas_src>

<mosaic_0001>
module attributes {stable_mosaic.version = 11 : i64} {
  func.func @mlp_packed_kernel(%arg0: i32, %arg1: memref<8x512xf32, #tpu.memory_space<vmem>>, %arg2: memref<512x512xf32, #tpu.memory_space<vmem>>, %arg3: memref<1x512xf32, #tpu.memory_space<vmem>>, %arg4: memref<512x128xf32, #tpu.memory_space<vmem>>, %arg5: memref<1x128xf32, #tpu.memory_space<vmem>>, %arg6: memref<8x128xf32, #tpu.memory_space<vmem>>) attributes {dimension_semantics = [#tpu.dimension_semantics<parallel>], iteration_bounds = array<i64: 1>, scalar_prefetch = 0 : i64, scratch_operands = 0 : i64, tpu.core_type = #tpu.core_type<tc>, window_params = [{transform_indices = @transform_0, window_bounds = array<i64: 8, 512>}, {pipeline_mode = #tpu.pipeline_mode<synchronous>, transform_indices = @transform_1, window_bounds = array<i64: 512, 512>}, {pipeline_mode = #tpu.pipeline_mode<synchronous>, transform_indices = @transform_2, window_bounds = array<i64: 1, 512>}, {pipeline_mode = #tpu.pipeline_mode<synchronous>, transform_indices = @transform_3, window_bounds = array<i64: 512, 128>}, {pipeline_mode = #tpu.pipeline_mode<synchronous>, transform_indices = @transform_4, window_bounds = array<i64: 1, 128>}, {transform_indices = @transform_5, window_bounds = array<i64: 8, 128>}]} {
    %c0 = arith.constant 0 : index
    %c0_0 = arith.constant 0 : index
    %0 = vector.load %arg1[%c0, %c0_0] : memref<8x512xf32, #tpu.memory_space<vmem>>, vector<8x512xf32>
    %c0_1 = arith.constant 0 : index
    %c0_2 = arith.constant 0 : index
    %1 = vector.load %arg2[%c0_1, %c0_2] : memref<512x512xf32, #tpu.memory_space<vmem>>, vector<512x512xf32>
    %cst = arith.constant dense<0.000000e+00> : vector<8x512xf32>
    %2 = tpu.matmul %0, %1, %cst {dimension_numbers = #tpu.dot_dimension_numbers<[1], [0], [0], [1], [0, 0, 1, 1], [], []>} : vector<8x512xf32>, vector<512x512xf32>, vector<8x512xf32> -> vector<8x512xf32>
    %c0_3 = arith.constant 0 : index
    %c0_4 = arith.constant 0 : index
    %3 = vector.load %arg3[%c0_3, %c0_4] : memref<1x512xf32, #tpu.memory_space<vmem>>, vector<1x512xf32>
    %4 = vector.broadcast %3 : vector<1x512xf32> to vector<8x512xf32>
    %5 = arith.addf %2, %4 : vector<8x512xf32>
    %cst_5 = arith.constant 0.000000e+00 : f32
    %6 = vector.broadcast %cst_5 : f32 to vector<8x512xf32>
    %7 = arith.cmpf ogt, %5, %6 : vector<8x512xf32>
    %cst_6 = arith.constant 0.00999999977 : f32
    %8 = vector.broadcast %cst_6 : f32 to vector<8x512xf32>
    %9 = arith.mulf %8, %5 : vector<8x512xf32>
    %10 = arith.select %7, %5, %9 : vector<8x512xi1>, vector<8x512xf32>
    %c0_7 = arith.constant 0 : index
    %c0_8 = arith.constant 0 : index
    %11 = vector.load %arg4[%c0_7, %c0_8] : memref<512x128xf32, #tpu.memory_space<vmem>>, vector<512x128xf32>
    %cst_9 = arith.constant dense<0.000000e+00> : vector<8x128xf32>
    %12 = tpu.matmul %10, %11, %cst_9 {dimension_numbers = #tpu.dot_dimension_numbers<[1], [0], [0], [1], [0, 0, 1, 1], [], []>} : vector<8x512xf32>, vector<512x128xf32>, vector<8x128xf32> -> vector<8x128xf32>
    %c0_10 = arith.constant 0 : index
    %c0_11 = arith.constant 0 : index
    %13 = vector.load %arg5[%c0_10, %c0_11] : memref<1x128xf32, #tpu.memory_space<vmem>>, vector<1x128xf32>
    %14 = vector.broadcast %13 : vector<1x128xf32> to vector<8x128xf32>
    %15 = arith.addf %12, %14 : vector<8x128xf32>
    %16 = arith.negf %15 : vector<8x128xf32>
    %17 = math.exp %16 : vector<8x128xf32>
    %cst_12 = arith.constant 1.000000e+00 : f32
    %18 = vector.broadcast %cst_12 : f32 to vector<8x128xf32>
    %19 = arith.addf %18, %17 : vector<8x128xf32>
    %20 = arith.divf %18, %19 : vector<8x128xf32>
    %c0_13 = arith.constant 0 : index
    %c0_14 = arith.constant 0 : index
    %21 = vector.load %arg6[%c0_13, %c0_14] : memref<8x128xf32, #tpu.memory_space<vmem>>, vector<8x128xf32>
    tpu.vector_store %arg6[%c0_13, %c0_14], %20 {strides = array<i32>} : memref<8x128xf32, #tpu.memory_space<vmem>>, vector<8x128xf32>,
    return
  }
  func.func @transform_0(%arg0: i32) -> (i32, i32) {
    %c0_i32 = arith.constant 0 : i32
    %c0_i32_0 = arith.constant 0 : i32
    return %arg0, %c0_i32 : i32, i32
  }
  func.func @transform_1(%arg0: i32) -> (i32, i32) {
    %c0_i32 = arith.constant 0 : i32
    %c0_i32_0 = arith.constant 0 : i32
    %c0_i32_1 = arith.constant 0 : i32
    return %c0_i32, %c0_i32_0 : i32, i32
  }
  func.func @transform_2(%arg0: i32) -> (i32, i32) {
    %c0_i32 = arith.constant 0 : i32
    %c0_i32_0 = arith.constant 0 : i32
    %c0_i32_1 = arith.constant 0 : i32
    return %c0_i32, %c0_i32_0 : i32, i32
  }
  func.func @transform_3(%arg0: i32) -> (i32, i32) {
    %c0_i32 = arith.constant 0 : i32
    %c0_i32_0 = arith.constant 0 : i32
    %c0_i32_1 = arith.constant 0 : i32
    return %c0_i32, %c0_i32_0 : i32, i32
  }
  func.func @transform_4(%arg0: i32) -> (i32, i32) {
    %c0_i32 = arith.constant 0 : i32
    %c0_i32_0 = arith.constant 0 : i32
    %c0_i32_1 = arith.constant 0 : i32
    return %c0_i32, %c0_i32_0 : i32, i32
  }
  func.func @transform_5(%arg0: i32) -> (i32, i32) {
    %c0_i32 = arith.constant 0 : i32
    %c0_i32_0 = arith.constant 0 : i32
    return %arg0, %c0_i32 : i32, i32
  }
}

</mosaic_0001>

<bundles_post_ra>
// kernel: tpu_custom_call.1
= control target key start
LH: loop header
LB: loop body
LE: loop exit
PB: predicated region body
PF: predicated region fallthrough
CT: control target
= control target key end

     0   :  { %10 = vsyncpa [#allocation3], 0  ;;  %s1470_s0 = inlined_call_operand.hbm [shape: f32[8,512], index: 0, kind: input, shape index: {}]   ;;  %s1471_s1 = inlined_call_operand.hbm [shape: f32[512,512], index: 1, kind: input, shape index: {}]   ;;  %s1472_s2 = inlined_call_operand.vmem [shape: f32[1,512], index: 2, kind: input, shape index: {}]   ;;  %s1473_s3 = inlined_call_operand.hbm [shape: f32[512,128], index: 3, kind: input, shape index: {}]   ;;  %s1474_s4 = inlined_call_operand.vmem [shape: f32[1,128], index: 4, kind: input, shape index: {}]   ;;  %s1475_s5 = inlined_call_operand.hbm [shape: f32[8,128], index: 5, kind: output, shape index: {}]  }
   0x1   :  { %11 = vsyncpa [#allocation6], 0 }
   0x2   :  { %12 = vsyncpa [#allocation4], 0  ;;  %s1378_s18 = smov [#allocation5]   ;;  %s1284_s22 = scalar_lea.hbm %s1471_s1, 32768 }
   0x3   :  { %s28_s19 = sshll.u32 %s1378_s18, 4  ;;  %p1285_p0 = scmp.ne.s32.totalorder %s1471_s1, %s1284_s22  ;;  %s29_s19 = int_to_ptr.vmem [resolvable:$true] %s28_s19 }
   0x4   :  { %p1288_p1 = scmp.lt.u32.totalorder %s1284_s22, %s1471_s1 }
   0x6   :  { %p1290_p2 = pnand %p1288_p1, %p1285_p0 }
   0x8   :  { %1293 = shalt.err (!%p1290_p2)
}
   0x9   :  { %s1294_s27 = scalar_lea.vmem %s29_s19, 32768  ;;  %p1299_p4 = scmp.lt.s32.totalorder %s29_s19, %s29_s19 }
   0xa   :  { %p1295_p3 = scmp.ne.s32.totalorder %s29_s19, %s1294_s27  ;;  %p1300_p5 = scmp.lt.s32.totalorder %s1294_s27, %s1294_s27 }
   0xc   :  { %p1301_p6 = por %p1300_p5, %p1299_p4 }
   0xe   :  { %p1302_p7 = pnand %p1301_p6, %p1295_p3 }
  0x10   :  { %1305 = shalt.err (!%p1302_p7)
}
  0x11   :  { %s1379_s28 = smov 512   ;;  %s1380_s29 = smov 32  }
  0x12   :  { %34 = dma.hbm_to_vmem [thread:$0]  %s1471_s1, 32768, %s29_s19, [#allocation6], %s1379_s28, %s1379_s28, %s1380_s29  }
  0x13   :  { %s1381_s7 = smov [#allocation2]   ;;  %s1382_s9 = smov [#allocation7]  }
  0x14   :  { %s19_s8 = sshll.u32 %s1381_s7, 4  ;;  %s42_s10 = sshll.u32 %s1382_s9, 4  ;;  %s20_s8 = int_to_ptr.vmem [resolvable:$true] %s19_s8  ;;  %s43_s10 = int_to_ptr.vmem [resolvable:$true] %s42_s10 }
  0x15   :  { %s1306_s13 = scalar_lea.hbm %s1470_s0, 512 }
  0x16   :  { %p1307_p8 = scmp.ne.s32.totalorder %s1470_s0, %s1306_s13  ;;  %p1310_p9 = scmp.lt.u32.totalorder %s1306_s13, %s1470_s0 }
  0x18   :  { %p1312_p10 = pnand %p1310_p9, %p1307_p8 }
  0x1a   :  { %1315 = shalt.err (!%p1312_p10)
}
  0x1b   :  { %s1316_s1 = scalar_lea.vmem %s20_s8, 512  ;;  %p1321_p12 = scmp.lt.s32.totalorder %s20_s8, %s20_s8 }
  0x1c   :  { %p1317_p11 = scmp.ne.s32.totalorder %s20_s8, %s1316_s1  ;;  %p1322_p13 = scmp.lt.s32.totalorder %s1316_s1, %s1316_s1 }
  0x1e   :  { %p1323_p0 = por %p1322_p13, %p1321_p12 }
  0x20   :  { %p1324_p1 = pnand %p1323_p0, %p1317_p11 }
  0x22   :  { %1327 = shalt.err (!%p1324_p1)
}
  0x23   :  { %22 = dma.hbm_to_vmem [thread:$0]  %s1470_s0, 512, %s20_s8, [#allocation3]  }
  0x24   :  { %s1328_s22 = scalar_lea.hbm %s1473_s3, 8192 }
  0x25   :  { %p1329_p2 = scmp.ne.s32.totalorder %s1473_s3, %s1328_s22  ;;  %p1332_p3 = scmp.lt.u32.totalorder %s1328_s22, %s1473_s3 }
  0x27   :  { %p1334_p4 = pnand %p1332_p3, %p1329_p2 }
  0x29   :  { %1337 = shalt.err (!%p1334_p4)
}
  0x2a   :  { %s1338_s27 = scalar_lea.vmem %s43_s10, 8192  ;;  %p1343_p6 = scmp.lt.s32.totalorder %s43_s10, %s43_s10 }
  0x2b   :  { %p1339_p5 = scmp.ne.s32.totalorder %s43_s10, %s1338_s27  ;;  %p1344_p7 = scmp.lt.s32.totalorder %s1338_s27, %s1338_s27 }
  0x2d   :  { %p1345_p8 = por %p1344_p7, %p1343_p6 }
  0x2f   :  { %p1346_p9 = pnand %p1345_p8, %p1339_p5 }
  0x31   :  { %1349 = shalt.err (!%p1346_p9)
}
  0x32   :  { %s1383_s0 = smov 128   ;;  %s1384_s28 = smov 8  }
  0x33   :  { %48 = dma.hbm_to_vmem [thread:$0]  %s1473_s3, 8192, %s43_s10, [#allocation6], %s1383_s0, %s1383_s0, %s1384_s28  }
  0x34   :  { %1372 = dma.done.wait [#allocation3], 512  }
  0x35   :  { %1373 = vsyncadd [#allocation3], 4294966784 }
  0x36   :  { %1374 = dma.done.wait [#allocation6], 40960  }
  0x37   :  { %1375 = vsyncadd [#allocation6], 4294926336  ;;  %v65_v0 = vld [vmem:[#allocation5 + $0x8] sm:$0xff]  ;;  %v67_v2 = vld [vmem:[#allocation5 + $0x18] sm:$0xff]  ;;  %s1385_s8 = smov [#allocation8]  }
  0x38   :  { %v69_v1 = vld [vmem:[#allocation5 + $0x28] sm:$0xff]  ;;  %v71_v4 = vld [vmem:[#allocation5 + $0x38] sm:$0xff]  ;;  %v64_v5 = vld [vmem:[#allocation5] sm:$0xff]  ;;  %s862_s9 = sshll.u32 %s1385_s8, 4  ;;  %s863_s9 = int_to_ptr.vmem [resolvable:$true] %s862_s9 }
  0x39   :  { %v944_v3 = vpack.c.bf16 %v69_v1, %v65_v0  ;;  %v68_v6 = vld [vmem:[#allocation5 + $0x20] sm:$0xff]  ;;  %v1072_v7 = vpack.c.bf16 %v71_v4, %v67_v2  ;;  %v66_v9 = vld [vmem:[#allocation5 + $0x10] sm:$0xff]  ;;  %v73_v11 = vld [vmem:[#allocation5 + $0x48] sm:$0xff]  ;;  %s1350_s10 = scalar_lea.vmem %s863_s9, 128  ;;  %p1355_p11 = scmp.lt.s32.totalorder %s863_s9, %s863_s9 }
  0x3a   :  { %v946_v8 = vpack.c.bf16 %v68_v6, %v64_v5  ;;  %v70_v10 = vld [vmem:[#allocation5 + $0x30] sm:$0xff]  ;;  %v77_v13 = vld [vmem:[#allocation5 + $0x68] sm:$0xff]  ;;  %v75_v14 = vld [vmem:[#allocation5 + $0x58] sm:$0xff]  ;;  %p1351_p10 = scmp.ne.s32.totalorder %s863_s9, %s1350_s10  ;;  %p1356_p12 = scmp.lt.s32.totalorder %s1350_s10, %s1350_s10 }
  0x3b   :  { %945 = vmatprep.subr.bf16.mxu0 %v944_v3  ;;  %v1074_v12 = vpack.c.bf16 %v70_v10, %v66_v9  ;;  %v79_v15 = vld [vmem:[#allocation5 + $0x78] sm:$0xff]  ;;  %1073 = vmatprep.subr.bf16.mxu1 %v1072_v7  ;;  %v948_v16 = vpack.c.bf16 %v77_v13, %v73_v11  ;;  %v72_v18 = vld [vmem:[#allocation5 + $0x40] sm:$0xff]  ;;  %v74_v20 = vld [vmem:[#allocation5 + $0x50] sm:$0xff] }
  0x3c   :  { %947 = vmatpush1.bf16.msra.mxu0 %v946_v8  ;;  %v1076_v17 = vpack.c.bf16 %v79_v15, %v75_v14  ;;  %v76_v19 = vld [vmem:[#allocation5 + $0x60] sm:$0xff]  ;;  %v78_v22 = vld [vmem:[#allocation5 + $0x70] sm:$0xff]  ;;  %v81_v23 = vld [vmem:[#allocation5 + $0x88] sm:$0xff]  ;;  %p1357_p13 = por %p1356_p12, %p1355_p11 }
  0x3d   :  { %1075 = vmatpush1.bf16.msra.mxu1 %v1074_v12  ;;  %v950_v21 = vpack.c.bf16 %v76_v19, %v72_v18  ;;  %v85_v24 = vld [vmem:[#allocation5 + $0xa8] sm:$0xff]  ;;  %949 = vmatprep.subr.bf16.mxu0 %v948_v16  ;;  %v1078_v25 = vpack.c.bf16 %v78_v22, %v74_v20  ;;  %v83_v27 = vld [vmem:[#allocation5 + $0x98] sm:$0xff]  ;;  %v80_v29 = vld [vmem:[#allocation5 + $0x80] sm:$0xff] }
  0x3e   :  { %1077 = vmatprep.subr.bf16.mxu1 %v1076_v17  ;;  %v952_v26 = vpack.c.bf16 %v85_v24, %v81_v23  ;;  %v87_v28 = vld [vmem:[#allocation5 + $0xb8] sm:$0xff]  ;;  %v84_v31 = vld [vmem:[#allocation5 + $0xa0] sm:$0xff]  ;;  %v82_v32 = vld [vmem:[#allocation5 + $0x90] sm:$0xff]  ;;  %p1358_p0 = pnand %p1357_p13, %p1351_p10 }
  0x3f   :  { %v1080_v30 = vpack.c.bf16 %v87_v28, %v83_v27  ;;  %v86_v33 = vld [vmem:[#allocation5 + $0xb0] sm:$0xff]  ;;  %v954_v34 = vpack.c.bf16 %v84_v31, %v80_v29  ;;  %v89_v35 = vld [vmem:[#allocation5 + $0xc8] sm:$0xff]  ;;  %v91_v37 = vld [vmem:[#allocation5 + $0xd8] sm:$0xff] }
  0x40   :  { %951 = vmatpush1.bf16.msra.mxu0 %v950_v21  ;;  %v93_v36 = vld [vmem:[#allocation5 + $0xe8] sm:$0xff]  ;;  %v1082_v38 = vpack.c.bf16 %v86_v33, %v82_v32  ;;  %v95_v40 = vld [vmem:[#allocation5 + $0xf8] sm:$0xff]  ;;  %v88_v41 = vld [vmem:[#allocation5 + $0xc0] sm:$0xff] }
  0x41   :  { %1079 = vmatpush1.bf16.msra.mxu1 %v1078_v25  ;;  %953 = vmatprep.subr.bf16.mxu0 %v952_v26  ;;  %v956_v39 = vpack.c.bf16 %v93_v36, %v89_v35  ;;  %v92_v42 = vld [vmem:[#allocation5 + $0xe0] sm:$0xff]  ;;  %v1084_v43 = vpack.c.bf16 %v95_v40, %v91_v37  ;;  %v90_v44 = vld [vmem:[#allocation5 + $0xd0] sm:$0xff]  ;;  %v97_v46 = vld [vmem:[#allocation5 + $0x108] sm:$0xff] }
  0x42   :  { %1081 = vmatprep.subr.bf16.mxu1 %v1080_v30  ;;  %v94_v45 = vld [vmem:[#allocation5 + $0xf0] sm:$0xff]  ;;  %v101_v47 = vld [vmem:[#allocation5 + $0x128] sm:$0xff]  ;;  %v99_v48 = vld [vmem:[#allocation5 + $0x118] sm:$0xff]  ;;  %v958_v50 = vpack.c.bf16 %v92_v42, %v88_v41 }
  0x43   :  { %v103_v49 = vld [vmem:[#allocation5 + $0x138] sm:$0xff]  ;;  %v1086_v51 = vpack.c.bf16 %v94_v45, %v90_v44  ;;  %v960_v52 = vpack.c.bf16 %v101_v47, %v97_v46  ;;  %v96_v53 = vld [vmem:[#allocation5 + $0x100] sm:$0xff]  ;;  %v98_v55 = vld [vmem:[#allocation5 + $0x110] sm:$0xff] }
  0x44   :  { %955 = vmatpush1.bf16.msra.mxu0 %v954_v34  ;;  %v100_v54 = vld [vmem:[#allocation5 + $0x120] sm:$0xff]  ;;  %v1088_v56 = vpack.c.bf16 %v103_v49, %v99_v48  ;;  %v102_v57 = vld [vmem:[#allocation5 + $0x130] sm:$0xff]  ;;  %v105_v58 = vld [vmem:[#allocation5 + $0x148] sm:$0xff] }
  0x45   :  { %1083 = vmatpush1.bf16.msra.mxu1 %v1082_v38  ;;  %957 = vmatprep.subr.bf16.mxu0 %v956_v39  ;;  %v109_v59 = vld [vmem:[#allocation5 + $0x168] sm:$0xff]  ;;  %v107_v60 = vld [vmem:[#allocation5 + $0x158] sm:$0xff]  ;;  %v962_v62 = vpack.c.bf16 %v100_v54, %v96_v53  ;;  %v1090_v63 = vpack.c.bf16 %v102_v57, %v98_v55  ;;  %v104_v1 = vld [vmem:[#allocation5 + $0x140] sm:$0xff] }
  0x46   :  { %1085 = vmatprep.subr.bf16.mxu1 %v1084_v43  ;;  %v111_v61 = vld [vmem:[#allocation5 + $0x178] sm:$0xff]  ;;  %v964_v0 = vpack.c.bf16 %v109_v59, %v105_v58  ;;  %v108_v2 = vld [vmem:[#allocation5 + $0x160] sm:$0xff]  ;;  %v106_v3 = vld [vmem:[#allocation5 + $0x150] sm:$0xff] }
  0x47   :  { %v1092_v4 = vpack.c.bf16 %v111_v61, %v107_v60  ;;  %v110_v5 = vld [vmem:[#allocation5 + $0x170] sm:$0xff]  ;;  %v113_v6 = vld [vmem:[#allocation5 + $0x188] sm:$0xff]  ;;  %v115_v8 = vld [vmem:[#allocation5 + $0x198] sm:$0xff]  ;;  %v966_v10 = vpack.c.bf16 %v108_v2, %v104_v1 }
  0x48   :  { %959 = vmatpush1.bf16.msra.mxu0 %v958_v50  ;;  %v117_v7 = vld [vmem:[#allocation5 + $0x1a8] sm:$0xff]  ;;  %v119_v9 = vld [vmem:[#allocation5 + $0x1b8] sm:$0xff]  ;;  %v1094_v11 = vpack.c.bf16 %v110_v5, %v106_v3  ;;  %v112_v13 = vld [vmem:[#allocation5 + $0x180] sm:$0xff] }
  0x49   :  { %1087 = vmatpush1.bf16.msra.mxu1 %v1086_v51  ;;  %961 = vmatprep.subr.bf16.mxu0 %v960_v52  ;;  %v968_v12 = vpack.c.bf16 %v117_v7, %v113_v6  ;;  %v116_v14 = vld [vmem:[#allocation5 + $0x1a0] sm:$0xff]  ;;  %v114_v15 = vld [vmem:[#allocation5 + $0x190] sm:$0xff]  ;;  %v1096_v16 = vpack.c.bf16 %v119_v9, %v115_v8  ;;  %v121_v18 = vld [vmem:[#allocation5 + $0x1c8] sm:$0xff] }
  0x4a   :  { %1089 = vmatprep.subr.bf16.mxu1 %v1088_v56  ;;  %v118_v17 = vld [vmem:[#allocation5 + $0x1b0] sm:$0xff]  ;;  %v125_v19 = vld [vmem:[#allocation5 + $0x1e8] sm:$0xff]  ;;  %v123_v20 = vld [vmem:[#allocation5 + $0x1d8] sm:$0xff]  ;;  %v970_v22 = vpack.c.bf16 %v116_v14, %v112_v13 }
  0x4b   :  { %v127_v21 = vld [vmem:[#allocation5 + $0x1f8] sm:$0xff]  ;;  %v1098_v23 = vpack.c.bf16 %v118_v17, %v114_v15  ;;  %v972_v24 = vpack.c.bf16 %v125_v19, %v121_v18  ;;  %v120_v25 = vld [vmem:[#allocation5 + $0x1c0] sm:$0xff]  ;;  %v122_v27 = vld [vmem:[#allocation5 + $0x1d0] sm:$0xff] }
  0x4c   :  { %963 = vmatpush1.bf16.msra.mxu0 %v962_v62  ;;  %v124_v26 = vld [vmem:[#allocation5 + $0x1e0] sm:$0xff]  ;;  %v1100_v28 = vpack.c.bf16 %v127_v21, %v123_v20  ;;  %v126_v29 = vld [vmem:[#allocation5 + $0x1f0] sm:$0xff]  ;;  %v129_v30 = vld [vmem:[#allocation5 + $0x208] sm:$0xff] }
  0x4d   :  { %1091 = vmatpush1.bf16.msra.mxu1 %v1090_v63  ;;  %965 = vmatprep.subr.bf16.mxu0 %v964_v0  ;;  %v133_v31 = vld [vmem:[#allocation5 + $0x228] sm:$0xff]  ;;  %v131_v32 = vld [vmem:[#allocation5 + $0x218] sm:$0xff]  ;;  %v974_v34 = vpack.c.bf16 %v124_v26, %v120_v25  ;;  %v1102_v35 = vpack.c.bf16 %v126_v29, %v122_v27  ;;  %v128_v37 = vld [vmem:[#allocation5 + $0x200] sm:$0xff] }
  0x4e   :  { %1093 = vmatprep.subr.bf16.mxu1 %v1092_v4  ;;  %v135_v33 = vld [vmem:[#allocation5 + $0x238] sm:$0xff]  ;;  %v976_v36 = vpack.c.bf16 %v133_v31, %v129_v30  ;;  %v132_v38 = vld [vmem:[#allocation5 + $0x220] sm:$0xff]  ;;  %v130_v39 = vld [vmem:[#allocation5 + $0x210] sm:$0xff] }
  0x4f   :  { %v1104_v40 = vpack.c.bf16 %v135_v33, %v131_v32  ;;  %v134_v41 = vld [vmem:[#allocation5 + $0x230] sm:$0xff]  ;;  %v137_v42 = vld [vmem:[#allocation5 + $0x248] sm:$0xff]  ;;  %v139_v44 = vld [vmem:[#allocation5 + $0x258] sm:$0xff]  ;;  %v978_v46 = vpack.c.bf16 %v132_v38, %v128_v37 }
  0x50   :  { %967 = vmatpush1.bf16.msra.mxu0 %v966_v10  ;;  %v141_v43 = vld [vmem:[#allocation5 + $0x268] sm:$0xff]  ;;  %v143_v45 = vld [vmem:[#allocation5 + $0x278] sm:$0xff]  ;;  %v1106_v47 = vpack.c.bf16 %v134_v41, %v130_v39  ;;  %v136_v49 = vld [vmem:[#allocation5 + $0x240] sm:$0xff] }
  0x51   :  { %1095 = vmatpush1.bf16.msra.mxu1 %v1094_v11  ;;  %969 = vmatprep.subr.bf16.mxu0 %v968_v12  ;;  %v980_v48 = vpack.c.bf16 %v141_v43, %v137_v42  ;;  %v140_v50 = vld [vmem:[#allocation5 + $0x260] sm:$0xff]  ;;  %v138_v51 = vld [vmem:[#allocation5 + $0x250] sm:$0xff]  ;;  %v1108_v52 = vpack.c.bf16 %v143_v45, %v139_v44  ;;  %v145_v54 = vld [vmem:[#allocation5 + $0x288] sm:$0xff] }
  0x52   :  { %1097 = vmatprep.subr.bf16.mxu1 %v1096_v16  ;;  %v142_v53 = vld [vmem:[#allocation5 + $0x270] sm:$0xff]  ;;  %v149_v55 = vld [vmem:[#allocation5 + $0x2a8] sm:$0xff]  ;;  %v147_v56 = vld [vmem:[#allocation5 + $0x298] sm:$0xff]  ;;  %v982_v58 = vpack.c.bf16 %v140_v50, %v136_v49 }
  0x53   :  { %v151_v57 = vld [vmem:[#allocation5 + $0x2b8] sm:$0xff]  ;;  %v1110_v59 = vpack.c.bf16 %v142_v53, %v138_v51  ;;  %v984_v60 = vpack.c.bf16 %v149_v55, %v145_v54  ;;  %v144_v61 = vld [vmem:[#allocation5 + $0x280] sm:$0xff]  ;;  %v146_v63 = vld [vmem:[#allocation5 + $0x290] sm:$0xff] }
  0x54   :  { %971 = vmatpush1.bf16.msra.mxu0 %v970_v22  ;;  %v148_v62 = vld [vmem:[#allocation5 + $0x2a0] sm:$0xff]  ;;  %v1112_v0 = vpack.c.bf16 %v151_v57, %v147_v56  ;;  %v150_v1 = vld [vmem:[#allocation5 + $0x2b0] sm:$0xff]  ;;  %v153_v2 = vld [vmem:[#allocation5 + $0x2c8] sm:$0xff] }
  0x55   :  { %1099 = vmatpush1.bf16.msra.mxu1 %v1098_v23  ;;  %973 = vmatprep.subr.bf16.mxu0 %v972_v24  ;;  %v157_v3 = vld [vmem:[#allocation5 + $0x2e8] sm:$0xff]  ;;  %v155_v4 = vld [vmem:[#allocation5 + $0x2d8] sm:$0xff]  ;;  %v986_v6 = vpack.c.bf16 %v148_v62, %v144_v61  ;;  %v152_v7 = vld [vmem:[#allocation5 + $0x2c0] sm:$0xff]  ;;  %v1114_v8 = vpack.c.bf16 %v150_v1, %v146_v63 }
  0x56   :  { %1101 = vmatprep.subr.bf16.mxu1 %v1100_v28  ;;  %v159_v5 = vld [vmem:[#allocation5 + $0x2f8] sm:$0xff]  ;;  %v988_v9 = vpack.c.bf16 %v157_v3, %v153_v2  ;;  %v156_v10 = vld [vmem:[#allocation5 + $0x2e0] sm:$0xff]  ;;  %v154_v11 = vld [vmem:[#allocation5 + $0x2d0] sm:$0xff] }
  0x57   :  { %v158_v12 = vld [vmem:[#allocation5 + $0x2f0] sm:$0xff]  ;;  %v1116_v13 = vpack.c.bf16 %v159_v5, %v155_v4  ;;  %v161_v14 = vld [vmem:[#allocation5 + $0x308] sm:$0xff]  ;;  %v163_v17 = vld [vmem:[#allocation5 + $0x318] sm:$0xff]  ;;  %v990_v19 = vpack.c.bf16 %v156_v10, %v152_v7 }
  0x58   :  { %975 = vmatpush1.bf16.msra.mxu0 %v974_v34  ;;  %v165_v15 = vld [vmem:[#allocation5 + $0x328] sm:$0xff]  ;;  %v167_v18 = vld [vmem:[#allocation5 + $0x338] sm:$0xff]  ;;  %v1118_v20 = vpack.c.bf16 %v158_v12, %v154_v11  ;;  %v160_v22 = vld [vmem:[#allocation5 + $0x300] sm:$0xff] }
  0x59   :  { %1103 = vmatpush1.bf16.msra.mxu1 %v1102_v35  ;;  %977 = vmatprep.subr.bf16.mxu0 %v976_v36  ;;  %v61_v16 = vld [vmem:[#allocation2 + $0x8] sm:$0xff]  ;;  %v992_v21 = vpack.c.bf16 %v165_v15, %v161_v14  ;;  %v164_v23 = vld [vmem:[#allocation5 + $0x320] sm:$0xff]  ;;  %v162_v24 = vld [vmem:[#allocation5 + $0x310] sm:$0xff]  ;;  %v1120_v25 = vpack.c.bf16 %v167_v18, %v163_v17 }
  0x5a   :  { %1105 = vmatprep.subr.bf16.mxu1 %v1104_v40  ;;  %406 = vmatprep.mubr.f32.mxu0 %v61_v16  ;;  %v166_v26 = vld [vmem:[#allocation5 + $0x330] sm:$0xff]  ;;  %v169_v27 = vld [vmem:[#allocation5 + $0x348] sm:$0xff]  ;;  %v171_v29 = vld [vmem:[#allocation5 + $0x358] sm:$0xff]  ;;  %v994_v31 = vpack.c.bf16 %v164_v23, %v160_v22 }
  0x5b   :  { %548 = vmatprep.mubr.f32.mxu1 %v61_v16  ;;  %v173_v28 = vld [vmem:[#allocation5 + $0x368] sm:$0xff]  ;;  %v175_v30 = vld [vmem:[#allocation5 + $0x378] sm:$0xff]  ;;  %v1122_v32 = vpack.c.bf16 %v166_v26, %v162_v24  ;;  %v168_v34 = vld [vmem:[#allocation5 + $0x340] sm:$0xff] }
  0x5c   :  { %979 = vmatpush1.bf16.msra.mxu0 %v978_v46  ;;  %v996_v33 = vpack.c.bf16 %v173_v28, %v169_v27  ;;  %v172_v35 = vld [vmem:[#allocation5 + $0x360] sm:$0xff]  ;;  %v170_v36 = vld [vmem:[#allocation5 + $0x350] sm:$0xff]  ;;  %v1124_v37 = vpack.c.bf16 %v175_v30, %v171_v29  ;;  %v177_v39 = vld [vmem:[#allocation5 + $0x388] sm:$0xff] }
  0x5d   :  { %1107 = vmatpush1.bf16.msra.mxu1 %v1106_v47  ;;  %981 = vmatprep.subr.bf16.mxu0 %v980_v48  ;;  %v174_v38 = vld [vmem:[#allocation5 + $0x370] sm:$0xff]  ;;  %v181_v40 = vld [vmem:[#allocation5 + $0x3a8] sm:$0xff]  ;;  %v179_v41 = vld [vmem:[#allocation5 + $0x398] sm:$0xff]  ;;  %v998_v43 = vpack.c.bf16 %v172_v35, %v168_v34 }
  0x5e   :  { %1109 = vmatprep.subr.bf16.mxu1 %v1108_v52  ;;  %v183_v42 = vld [vmem:[#allocation5 + $0x3b8] sm:$0xff]  ;;  %v1126_v44 = vpack.c.bf16 %v174_v38, %v170_v36  ;;  %v1000_v45 = vpack.c.bf16 %v181_v40, %v177_v39  ;;  %v176_v46 = vld [vmem:[#allocation5 + $0x380] sm:$0xff]  ;;  %v178_v48 = vld [vmem:[#allocation5 + $0x390] sm:$0xff] }
  0x5f   :  { %v180_v47 = vld [vmem:[#allocation5 + $0x3a0] sm:$0xff]  ;;  %v1128_v49 = vpack.c.bf16 %v183_v42, %v179_v41  ;;  %v182_v50 = vld [vmem:[#allocation5 + $0x3b0] sm:$0xff]  ;;  %v185_v51 = vld [vmem:[#allocation5 + $0x3c8] sm:$0xff] }
  0x60   :  { %983 = vmatpush1.bf16.msra.mxu0 %v982_v58  ;;  %v189_v52 = vld [vmem:[#allocation5 + $0x3e8] sm:$0xff]  ;;  %v187_v53 = vld [vmem:[#allocation5 + $0x3d8] sm:$0xff]  ;;  %v1002_v55 = vpack.c.bf16 %v180_v47, %v176_v46  ;;  %v1130_v56 = vpack.c.bf16 %v182_v50, %v178_v48  ;;  %v184_v58 = vld [vmem:[#allocation5 + $0x3c0] sm:$0xff] }
  0x61   :  { %1111 = vmatpush1.bf16.msra.mxu1 %v1110_v59  ;;  %985 = vmatprep.subr.bf16.mxu0 %v984_v60  ;;  %v191_v54 = vld [vmem:[#allocation5 + $0x3f8] sm:$0xff]  ;;  %v1004_v57 = vpack.c.bf16 %v189_v52, %v185_v51  ;;  %v188_v59 = vld [vmem:[#allocation5 + $0x3e0] sm:$0xff]  ;;  %v186_v60 = vld [vmem:[#allocation5 + $0x3d0] sm:$0xff] }
  0x62   :  { %1113 = vmatprep.subr.bf16.mxu1 %v1112_v0  ;;  %v1132_v61 = vpack.c.bf16 %v191_v54, %v187_v53  ;;  %v190_v62 = vld [vmem:[#allocation5 + $0x3f0] sm:$0xff]  ;;  %v193_v63 = vld [vmem:[#allocation5 + $0x408] sm:$0xff]  ;;  %v195_v1 = vld [vmem:[#allocation5 + $0x418] sm:$0xff]  ;;  %v1006_v3 = vpack.c.bf16 %v188_v59, %v184_v58 }
  0x63   :  { %v197_v0 = vld [vmem:[#allocation5 + $0x428] sm:$0xff]  ;;  %v199_v2 = vld [vmem:[#allocation5 + $0x438] sm:$0xff]  ;;  %v1134_v4 = vpack.c.bf16 %v190_v62, %v186_v60  ;;  %v196_v7 = vld [vmem:[#allocation5 + $0x420] sm:$0xff] }
  0x64   :  { %987 = vmatpush1.bf16.msra.mxu0 %v986_v6  ;;  %v1008_v5 = vpack.c.bf16 %v197_v0, %v193_v63  ;;  %v192_v6 = vld [vmem:[#allocation5 + $0x400] sm:$0xff]  ;;  %v198_v10 = vld [vmem:[#allocation5 + $0x430] sm:$0xff]  ;;  %v201_v11 = vld [vmem:[#allocation5 + $0x448] sm:$0xff] }
  0x65   :  { %1115 = vmatpush1.bf16.msra.mxu1 %v1114_v8  ;;  %989 = vmatprep.subr.bf16.mxu0 %v988_v9  ;;  %v194_v8 = vld [vmem:[#allocation5 + $0x410] sm:$0xff]  ;;  %v1136_v9 = vpack.c.bf16 %v199_v2, %v195_v1  ;;  %v205_v12 = vld [vmem:[#allocation5 + $0x468] sm:$0xff]  ;;  %v207_v14 = vld [vmem:[#allocation5 + $0x478] sm:$0xff]  ;;  %v1010_v16 = vpack.c.bf16 %v196_v7, %v192_v6 }
  0x66   :  { %1117 = vmatprep.subr.bf16.mxu1 %v1116_v13  ;;  %v203_v13 = vld [vmem:[#allocation5 + $0x458] sm:$0xff]  ;;  %v60_v15 = vld [vmem:[#allocation2] sm:$0xff]  ;;  %v1138_v17 = vpack.c.bf16 %v198_v10, %v194_v8  ;;  %v1012_v18 = vpack.c.bf16 %v205_v12, %v201_v11  ;;  %v206_v23 = vld [vmem:[#allocation5 + $0x470] sm:$0xff] }
  0x67   :  { %v1140_v22 = vpack.c.bf16 %v207_v14, %v203_v13  ;;  %v209_v24 = vld [vmem:[#allocation5 + $0x488] sm:$0xff]  ;;  %v211_v26 = vld [vmem:[#allocation5 + $0x498] sm:$0xff]  ;;  %v214_v35 = vld [vmem:[#allocation5 + $0x4b0] sm:$0xff] }
  0x68   :  { %991 = vmatpush1.bf16.msra.mxu0 %v990_v19  ;;  %v200_v19 = vld [vmem:[#allocation5 + $0x440] sm:$0xff]  ;;  %v215_v27 = vld [vmem:[#allocation5 + $0x4b8] sm:$0xff]  ;;  %v217_v36 = vld [vmem:[#allocation5 + $0x4c8] sm:$0xff] }
  0x69   :  { %1119 = vmatpush1.bf16.msra.mxu1 %v1118_v20  ;;  %993 = vmatprep.subr.bf16.mxu0 %v992_v21  ;;  %v204_v20 = vld [vmem:[#allocation5 + $0x460] sm:$0xff]  ;;  %v202_v21 = vld [vmem:[#allocation5 + $0x450] sm:$0xff]  ;;  %v1144_v34 = vpack.c.bf16 %v215_v27, %v211_v26  ;;  %v219_v38 = vld [vmem:[#allocation5 + $0x4d8] sm:$0xff] }
  0x6a   :  { %1121 = vmatprep.subr.bf16.mxu1 %v1120_v25  ;;  %v213_v25 = vld [vmem:[#allocation5 + $0x4a8] sm:$0xff]  ;;  %v1014_v28 = vpack.c.bf16 %v204_v20, %v200_v19  ;;  %v1142_v29 = vpack.c.bf16 %v206_v23, %v202_v21  ;;  %v223_v39 = vld [vmem:[#allocation5 + $0x4f8] sm:$0xff]  ;;  %v222_v47 = vld [vmem:[#allocation5 + $0x4f0] sm:$0xff] }
  0x6b   :  { %v1016_v30 = vpack.c.bf16 %v213_v25, %v209_v24  ;;  %v1148_v46 = vpack.c.bf16 %v223_v39, %v219_v38  ;;  %v225_v48 = vld [vmem:[#allocation5 + $0x508] sm:$0xff]  ;;  %v227_v50 = vld [vmem:[#allocation5 + $0x518] sm:$0xff]  ;;  %v230_v59 = vld [vmem:[#allocation5 + $0x530] sm:$0xff] }
  0x6c   :  { %995 = vmatpush1.bf16.msra.mxu0 %v994_v31  ;;  %v208_v31 = vld [vmem:[#allocation5 + $0x480] sm:$0xff]  ;;  %v231_v51 = vld [vmem:[#allocation5 + $0x538] sm:$0xff]  ;;  %v233_v60 = vld [vmem:[#allocation5 + $0x548] sm:$0xff] }
  0x6d   :  { %1123 = vmatpush1.bf16.msra.mxu1 %v1122_v32  ;;  %997 = vmatprep.subr.bf16.mxu0 %v996_v33  ;;  %v212_v32 = vld [vmem:[#allocation5 + $0x4a0] sm:$0xff]  ;;  %v210_v33 = vld [vmem:[#allocation5 + $0x490] sm:$0xff]  ;;  %v1152_v58 = vpack.c.bf16 %v231_v51, %v227_v50  ;;  %v235_v62 = vld [vmem:[#allocation5 + $0x558] sm:$0xff] }
  0x6e   :  { %1125 = vmatprep.subr.bf16.mxu1 %v1124_v37  ;;  %v221_v37 = vld [vmem:[#allocation5 + $0x4e8] sm:$0xff]  ;;  %v1018_v40 = vpack.c.bf16 %v212_v32, %v208_v31  ;;  %v1146_v41 = vpack.c.bf16 %v214_v35, %v210_v33  ;;  %v239_v63 = vld [vmem:[#allocation5 + $0x578] sm:$0xff]  ;;  %v238_v7 = vld [vmem:[#allocation5 + $0x570] sm:$0xff] }
  0x6f   :  { %v1020_v42 = vpack.c.bf16 %v221_v37, %v217_v36  ;;  %v1156_v6 = vpack.c.bf16 %v239_v63, %v235_v62  ;;  %v241_v8 = vld [vmem:[#allocation5 + $0x588] sm:$0xff]  ;;  %v243_v10 = vld [vmem:[#allocation5 + $0x598] sm:$0xff]  ;;  %v240_v13 = vld [vmem:[#allocation5 + $0x580] sm:$0xff] }
  0x70   :  { %999 = vmatpush1.bf16.msra.mxu0 %v998_v43  ;;  %v216_v43 = vld [vmem:[#allocation5 + $0x4c0] sm:$0xff]  ;;  %v247_v11 = vld [vmem:[#allocation5 + $0x5b8] sm:$0xff]  ;;  %v249_v20 = vld [vmem:[#allocation5 + $0x5c8] sm:$0xff] }
  0x71   :  { %1127 = vmatpush1.bf16.msra.mxu1 %v1126_v44  ;;  %1001 = vmatprep.subr.bf16.mxu0 %v1000_v45  ;;  %v220_v44 = vld [vmem:[#allocation5 + $0x4e0] sm:$0xff]  ;;  %v218_v45 = vld [vmem:[#allocation5 + $0x4d0] sm:$0xff]  ;;  %v1160_v19 = vpack.c.bf16 %v247_v11, %v243_v10  ;;  %v253_v21 = vld [vmem:[#allocation5 + $0x5e8] sm:$0xff] }
  0x72   :  { %1129 = vmatprep.subr.bf16.mxu1 %v1128_v49  ;;  %v229_v49 = vld [vmem:[#allocation5 + $0x528] sm:$0xff]  ;;  %v1022_v52 = vpack.c.bf16 %v220_v44, %v216_v43  ;;  %v1150_v53 = vpack.c.bf16 %v222_v47, %v218_v45  ;;  %v251_v23 = vld [vmem:[#allocation5 + $0x5d8] sm:$0xff]  ;;  %v1036_v27 = vpack.c.bf16 %v253_v21, %v249_v20  ;;  %v254_v32 = vld [vmem:[#allocation5 + $0x5f0] sm:$0xff] }
  0x73   :  { %v1024_v54 = vpack.c.bf16 %v229_v49, %v225_v48  ;;  %v255_v24 = vld [vmem:[#allocation5 + $0x5f8] sm:$0xff]  ;;  %v257_v33 = vld [vmem:[#allocation5 + $0x608] sm:$0xff]  ;;  %v262_v44 = vld [vmem:[#allocation5 + $0x630] sm:$0xff] }
  0x74   :  { %1003 = vmatpush1.bf16.msra.mxu0 %v1002_v55  ;;  %v224_v55 = vld [vmem:[#allocation5 + $0x500] sm:$0xff]  ;;  %v1164_v31 = vpack.c.bf16 %v255_v24, %v251_v23  ;;  %v259_v35 = vld [vmem:[#allocation5 + $0x618] sm:$0xff]  ;;  %v265_v45 = vld [vmem:[#allocation5 + $0x648] sm:$0xff] }
  0x75   :  { %1131 = vmatpush1.bf16.msra.mxu1 %v1130_v56  ;;  %1005 = vmatprep.subr.bf16.mxu0 %v1004_v57  ;;  %v228_v56 = vld [vmem:[#allocation5 + $0x520] sm:$0xff]  ;;  %v226_v57 = vld [vmem:[#allocation5 + $0x510] sm:$0xff]  ;;  %v263_v36 = vld [vmem:[#allocation5 + $0x638] sm:$0xff] }
  0x76   :  { %1133 = vmatprep.subr.bf16.mxu1 %v1132_v61  ;;  %v237_v61 = vld [vmem:[#allocation5 + $0x568] sm:$0xff]  ;;  %v1026_v0 = vpack.c.bf16 %v228_v56, %v224_v55  ;;  %v1154_v1 = vpack.c.bf16 %v230_v59, %v226_v57  ;;  %v1168_v43 = vpack.c.bf16 %v263_v36, %v259_v35  ;;  %v267_v47 = vld [vmem:[#allocation5 + $0x658] sm:$0xff]  ;;  %v270_v56 = vld [vmem:[#allocation5 + $0x670] sm:$0xff] }
  0x77   :  { %v1028_v2 = vpack.c.bf16 %v237_v61, %v233_v60  ;;  %v271_v48 = vld [vmem:[#allocation5 + $0x678] sm:$0xff]  ;;  %v273_v57 = vld [vmem:[#allocation5 + $0x688] sm:$0xff]  ;;  %v288_v24 = vld [vmem:[#allocation5 + $0x700] sm:$0xff] }
  0x78   :  { %1007 = vmatpush1.bf16.msra.mxu0 %v1006_v3  ;;  %v232_v3 = vld [vmem:[#allocation5 + $0x540] sm:$0xff]  ;;  %v1172_v55 = vpack.c.bf16 %v271_v48, %v267_v47  ;;  %v275_v59 = vld [vmem:[#allocation5 + $0x698] sm:$0xff] }
  0x79   :  { %1135 = vmatpush1.bf16.msra.mxu1 %v1134_v4  ;;  %1009 = vmatprep.subr.bf16.mxu0 %v1008_v5  ;;  %v236_v4 = vld [vmem:[#allocation5 + $0x560] sm:$0xff]  ;;  %v234_v5 = vld [vmem:[#allocation5 + $0x550] sm:$0xff]  ;;  %v279_v60 = vld [vmem:[#allocation5 + $0x6b8] sm:$0xff] }
  0x7a   :  { %1137 = vmatprep.subr.bf16.mxu1 %v1136_v9  ;;  %v245_v9 = vld [vmem:[#allocation5 + $0x5a8] sm:$0xff]  ;;  %v1030_v12 = vpack.c.bf16 %v236_v4, %v232_v3  ;;  %v1158_v14 = vpack.c.bf16 %v238_v7, %v234_v5  ;;  %v1176_v3 = vpack.c.bf16 %v279_v60, %v275_v59  ;;  %v278_v4 = vld [vmem:[#allocation5 + $0x6b0] sm:$0xff]  ;;  %v283_v7 = vld [vmem:[#allocation5 + $0x6d8] sm:$0xff] }
  0x7b   :  { %407 = vmatmul.mubr.f32.vlgmr.msra.gmra.mrb[0].mxu0 %v60_v15  ;;  %v281_v5 = vld [vmem:[#allocation5 + $0x6c8] sm:$0xff]  ;;  %v295_v20 = vld [vmem:[#allocation5 + $0x738] sm:$0xff]  ;;  %v296_v36 = vld [vmem:[#allocation5 + $0x740] sm:$0xff] }
  0x7c   :  { %1011 = vmatpush1.bf16.msra.mxu0 %v1010_v16  ;;  %549 = vmatmul.mubr.f32.vlgmr.msra.gmra.mrb[0].mxu1 %v60_v15  ;;  %v1032_v15 = vpack.c.bf16 %v245_v9, %v241_v8  ;;  %v244_v16 = vld [vmem:[#allocation5 + $0x5a0] sm:$0xff]  ;;  %v287_v8 = vld [vmem:[#allocation5 + $0x6f8] sm:$0xff] }
  0x7d   :  { %1139 = vmatpush1.bf16.msra.mxu1 %v1138_v17  ;;  %1013 = vmatprep.subr.bf16.mxu0 %v1012_v18  ;;  %v242_v17 = vld [vmem:[#allocation5 + $0x590] sm:$0xff]  ;;  %v1034_v25 = vpack.c.bf16 %v244_v16, %v240_v13  ;;  %v284_v13 = vld [vmem:[#allocation5 + $0x6e0] sm:$0xff] }
  0x7e   :  { %1141 = vmatprep.subr.bf16.mxu1 %v1140_v22  ;;  %v246_v18 = vld [vmem:[#allocation5 + $0x5b0] sm:$0xff]  ;;  %v63_v22 = vld [vmem:[#allocation2 + $0x18] sm:$0xff]  ;;  %v304_v48 = vld [vmem:[#allocation5 + $0x780] sm:$0xff] }
  0x7f   :  { %477 = vmatprep.mubr.f32.mxu0 %v63_v22  ;;  %619 = vmatprep.mubr.f32.mxu1 %v63_v22  ;;  %v1162_v26 = vpack.c.bf16 %v246_v18, %v242_v17  ;;  %v286_v16 = vld [vmem:[#allocation5 + $0x6f0] sm:$0xff]  ;;  %v289_v17 = vld [vmem:[#allocation5 + $0x708] sm:$0xff]  ;;  %v312_v60 = vld [vmem:[#allocation5 + $0x7c0] sm:$0xff] }
  0x80   :  { %1015 = vmatpush1.bf16.msra.mxu0 %v1014_v28  ;;  %v248_v28 = vld [vmem:[#allocation5 + $0x5c0] sm:$0xff]  ;;  %v293_v18 = vld [vmem:[#allocation5 + $0x728] sm:$0xff] }
  0x81   :  { %1143 = vmatpush1.bf16.msra.mxu1 %v1142_v29  ;;  %1017 = vmatprep.subr.bf16.mxu0 %v1016_v30  ;;  %v252_v29 = vld [vmem:[#allocation5 + $0x5e0] sm:$0xff]  ;;  %v250_v30 = vld [vmem:[#allocation5 + $0x5d0] sm:$0xff]  ;;  %v1056_v23 = vpack.c.bf16 %v293_v18, %v289_v17 }
  0x82   :  { %1145 = vmatprep.subr.bf16.mxu1 %v1144_v34  ;;  %v261_v34 = vld [vmem:[#allocation5 + $0x628] sm:$0xff]  ;;  %v1038_v37 = vpack.c.bf16 %v252_v29, %v248_v28  ;;  %v1166_v38 = vpack.c.bf16 %v254_v32, %v250_v30  ;;  %v294_v28 = vld [vmem:[#allocation5 + $0x730] sm:$0xff]  ;;  %v303_v32 = vld [vmem:[#allocation5 + $0x778] sm:$0xff] }
  0x83   :  { %v1040_v39 = vpack.c.bf16 %v261_v34, %v257_v33  ;;  %v297_v29 = vld [vmem:[#allocation5 + $0x748] sm:$0xff]  ;;  %v62_v17 = vld [vmem:[#allocation2 + $0x10] sm:$0xff] }
  0x84   :  { %1019 = vmatpush1.bf16.msra.mxu0 %v1018_v40  ;;  %v256_v40 = vld [vmem:[#allocation5 + $0x600] sm:$0xff]  ;;  %v301_v30 = vld [vmem:[#allocation5 + $0x768] sm:$0xff] }
  0x85   :  { %1147 = vmatpush1.bf16.msra.mxu1 %v1146_v41  ;;  %1021 = vmatprep.subr.bf16.mxu0 %v1020_v42  ;;  %v260_v41 = vld [vmem:[#allocation5 + $0x620] sm:$0xff]  ;;  %v258_v42 = vld [vmem:[#allocation5 + $0x610] sm:$0xff]  ;;  %v1060_v35 = vpack.c.bf16 %v301_v30, %v297_v29  ;;  %v691_v29 = vld [vmem:[#allocation7 + $0x1a8] sm:$0xff] }
  0x86   :  { %1149 = vmatprep.subr.bf16.mxu1 %v1148_v46  ;;  %v269_v46 = vld [vmem:[#allocation5 + $0x668] sm:$0xff]  ;;  %v1042_v49 = vpack.c.bf16 %v260_v41, %v256_v40  ;;  %v1170_v50 = vpack.c.bf16 %v262_v44, %v258_v42  ;;  %v302_v40 = vld [vmem:[#allocation5 + $0x770] sm:$0xff]  ;;  %v311_v44 = vld [vmem:[#allocation5 + $0x7b8] sm:$0xff] }
  0x87   :  { %v1044_v51 = vpack.c.bf16 %v269_v46, %v265_v45  ;;  %v305_v41 = vld [vmem:[#allocation5 + $0x788] sm:$0xff] }
  0x88   :  { %1023 = vmatpush1.bf16.msra.mxu0 %v1022_v52  ;;  %v264_v52 = vld [vmem:[#allocation5 + $0x640] sm:$0xff]  ;;  %v309_v42 = vld [vmem:[#allocation5 + $0x7a8] sm:$0xff] }
  0x89   :  { %1151 = vmatpush1.bf16.msra.mxu1 %v1150_v53  ;;  %1025 = vmatprep.subr.bf16.mxu0 %v1024_v54  ;;  %v268_v53 = vld [vmem:[#allocation5 + $0x660] sm:$0xff]  ;;  %v266_v54 = vld [vmem:[#allocation5 + $0x650] sm:$0xff]  ;;  %v1064_v47 = vpack.c.bf16 %v309_v42, %v305_v41  ;;  %v693_v41 = vld [vmem:[#allocation7 + $0x1b8] sm:$0xff] }
  0x8a   :  { %1153 = vmatprep.subr.bf16.mxu1 %v1152_v58  ;;  %v277_v58 = vld [vmem:[#allocation5 + $0x6a8] sm:$0xff]  ;;  %v1046_v61 = vpack.c.bf16 %v268_v53, %v264_v52  ;;  %v1174_v62 = vpack.c.bf16 %v270_v56, %v266_v54  ;;  %v310_v52 = vld [vmem:[#allocation5 + $0x7b0] sm:$0xff]  ;;  %v319_v56 = vld [vmem:[#allocation5 + $0x7f8] sm:$0xff] }
  0x8b   :  { %v1048_v63 = vpack.c.bf16 %v277_v58, %v273_v57  ;;  %v313_v53 = vld [vmem:[#allocation5 + $0x7c8] sm:$0xff] }
  0x8c   :  { %1027 = vmatpush1.bf16.msra.mxu0 %v1026_v0  ;;  %v272_v0 = vld [vmem:[#allocation5 + $0x680] sm:$0xff]  ;;  %v317_v54 = vld [vmem:[#allocation5 + $0x7e8] sm:$0xff] }
  0x8d   :  { %1155 = vmatpush1.bf16.msra.mxu1 %v1154_v1  ;;  %1029 = vmatprep.subr.bf16.mxu0 %v1028_v2  ;;  %v276_v1 = vld [vmem:[#allocation5 + $0x6a0] sm:$0xff]  ;;  %v274_v2 = vld [vmem:[#allocation5 + $0x690] sm:$0xff]  ;;  %v1068_v59 = vpack.c.bf16 %v317_v54, %v313_v53  ;;  %v695_v53 = vld [vmem:[#allocation7 + $0x1c8] sm:$0xff] }
  0x8e   :  { %1157 = vmatprep.subr.bf16.mxu1 %v1156_v6  ;;  %v285_v6 = vld [vmem:[#allocation5 + $0x6e8] sm:$0xff]  ;;  %v1050_v9 = vpack.c.bf16 %v276_v1, %v272_v0  ;;  %v1178_v10 = vpack.c.bf16 %v278_v4, %v274_v2  ;;  %v318_v0 = vld [vmem:[#allocation5 + $0x7f0] sm:$0xff]  ;;  %v654_v1 = vld [vmem:[#allocation7 + $0x80] sm:$0xff] }
  0x8f   :  { %v1052_v11 = vpack.c.bf16 %v285_v6, %v281_v5  ;;  %v655_v2 = vld [vmem:[#allocation7 + $0x88] sm:$0xff] }
  0x90   :  { %1031 = vmatpush1.bf16.msra.mxu0 %v1030_v12  ;;  %v280_v12 = vld [vmem:[#allocation5 + $0x6c0] sm:$0xff]  ;;  %v687_v4 = vld [vmem:[#allocation7 + $0x188] sm:$0xff] }
  0x91   :  { %1159 = vmatpush1.bf16.msra.mxu1 %v1158_v14  ;;  %1033 = vmatprep.subr.bf16.mxu0 %v1032_v15  ;;  %v282_v14 = vld [vmem:[#allocation5 + $0x6d0] sm:$0xff]  ;;  %v1180_v15 = vpack.c.bf16 %v287_v8, %v283_v7  ;;  %v1054_v21 = vpack.c.bf16 %v284_v13, %v280_v12  ;;  %v1200_v7 = vpack.c.bf16 %v655_v2, %v654_v1  ;;  %v638_v8 = vld [vmem:[#allocation7] sm:$0xff]  ;;  %v671_v12 = vld [vmem:[#allocation7 + $0x108] sm:$0xff] }
  0x92   :  { %1161 = vmatprep.subr.bf16.mxu1 %v1160_v19  ;;  %v291_v19 = vld [vmem:[#allocation5 + $0x718] sm:$0xff]  ;;  %v1182_v22 = vpack.c.bf16 %v286_v16, %v282_v14  ;;  %v656_v13 = vld [vmem:[#allocation7 + $0x90] sm:$0xff] }
  0x93   :  { %v657_v14 = vld [vmem:[#allocation7 + $0x98] sm:$0xff] }
  0x94   :  { %1035 = vmatpush1.bf16.msra.mxu0 %v1034_v25  ;;  %v292_v25 = vld [vmem:[#allocation5 + $0x720] sm:$0xff]  ;;  %v689_v16 = vld [vmem:[#allocation7 + $0x198] sm:$0xff] }
  0x95   :  { %1163 = vmatpush1.bf16.msra.mxu1 %v1162_v26  ;;  %1037 = vmatprep.subr.bf16.mxu0 %v1036_v27  ;;  %v290_v26 = vld [vmem:[#allocation5 + $0x710] sm:$0xff]  ;;  %v1184_v27 = vpack.c.bf16 %v295_v20, %v291_v19  ;;  %v1058_v33 = vpack.c.bf16 %v292_v25, %v288_v24  ;;  %v1204_v20 = vpack.c.bf16 %v657_v14, %v656_v13  ;;  %v673_v25 = vld [vmem:[#allocation7 + $0x118] sm:$0xff]  ;;  %v667_v13 = vld [vmem:[#allocation7 + $0xe8] sm:$0xff] }
  0x96   :  { %1165 = vmatprep.subr.bf16.mxu1 %v1164_v31  ;;  %v299_v31 = vld [vmem:[#allocation5 + $0x758] sm:$0xff]  ;;  %v1186_v34 = vpack.c.bf16 %v294_v28, %v290_v26  ;;  %v658_v26 = vld [vmem:[#allocation7 + $0xa0] sm:$0xff] }
  0x97   :  { %v690_v28 = vld [vmem:[#allocation7 + $0x1a0] sm:$0xff]  ;;  %v697_v1 = vld [vmem:[#allocation7 + $0x1d8] sm:$0xff] }
  0x98   :  { %1039 = vmatpush1.bf16.msra.mxu0 %v1038_v37  ;;  %v300_v37 = vld [vmem:[#allocation5 + $0x760] sm:$0xff] }
  0x99   :  { %1167 = vmatpush1.bf16.msra.mxu1 %v1166_v38  ;;  %1041 = vmatprep.subr.bf16.mxu0 %v1040_v39  ;;  %v298_v38 = vld [vmem:[#allocation5 + $0x750] sm:$0xff]  ;;  %v1188_v39 = vpack.c.bf16 %v303_v32, %v299_v31  ;;  %v1062_v45 = vpack.c.bf16 %v300_v37, %v296_v36  ;;  %v1240_v36 = vpack.c.bf16 %v691_v29, %v690_v28  ;;  %v675_v37 = vld [vmem:[#allocation7 + $0x128] sm:$0xff]  ;;  %v698_v14 = vld [vmem:[#allocation7 + $0x1e0] sm:$0xff] }
  0x9a   :  { %1169 = vmatprep.subr.bf16.mxu1 %v1168_v43  ;;  %v307_v43 = vld [vmem:[#allocation5 + $0x798] sm:$0xff]  ;;  %v1190_v46 = vpack.c.bf16 %v302_v40, %v298_v38  ;;  %v660_v38 = vld [vmem:[#allocation7 + $0xb0] sm:$0xff] }
  0x9b   :  { %v692_v40 = vld [vmem:[#allocation7 + $0x1b0] sm:$0xff]  ;;  %v701_v28 = vld [vmem:[#allocation7 + $0x1f8] sm:$0xff] }
  0x9c   :  { %1043 = vmatpush1.bf16.msra.mxu0 %v1042_v49  ;;  %v308_v49 = vld [vmem:[#allocation5 + $0x7a0] sm:$0xff]  ;;  %v652_v29 = vld [vmem:[#allocation7 + $0x70] sm:$0xff] }
  0x9d   :  { %1171 = vmatpush1.bf16.msra.mxu1 %v1170_v50  ;;  %1045 = vmatprep.subr.bf16.mxu0 %v1044_v51  ;;  %v306_v50 = vld [vmem:[#allocation5 + $0x790] sm:$0xff]  ;;  %v1192_v51 = vpack.c.bf16 %v311_v44, %v307_v43  ;;  %v1066_v57 = vpack.c.bf16 %v308_v49, %v304_v48  ;;  %v1244_v48 = vpack.c.bf16 %v693_v41, %v692_v40  ;;  %v677_v49 = vld [vmem:[#allocation7 + $0x138] sm:$0xff] }
  0x9e   :  { %1173 = vmatprep.subr.bf16.mxu1 %v1172_v55  ;;  %v315_v55 = vld [vmem:[#allocation5 + $0x7d8] sm:$0xff]  ;;  %v1194_v58 = vpack.c.bf16 %v310_v52, %v306_v50  ;;  %v662_v50 = vld [vmem:[#allocation7 + $0xc0] sm:$0xff] }
  0x9f   :  { %v694_v52 = vld [vmem:[#allocation7 + $0x1c0] sm:$0xff] }
  0xa0   :  { %1047 = vmatpush1.bf16.msra.mxu0 %v1046_v61  ;;  %v316_v61 = vld [vmem:[#allocation5 + $0x7e0] sm:$0xff] }
  0xa1   :  { %1175 = vmatpush1.bf16.msra.mxu1 %v1174_v62  ;;  %1049 = vmatprep.subr.bf16.mxu0 %v1048_v63  ;;  %v314_v62 = vld [vmem:[#allocation5 + $0x7d0] sm:$0xff]  ;;  %v1196_v63 = vpack.c.bf16 %v319_v56, %v315_v55  ;;  %v1070_v5 = vpack.c.bf16 %v316_v61, %v312_v60  ;;  %v1248_v60 = vpack.c.bf16 %v695_v53, %v694_v52  ;;  %v679_v61 = vld [vmem:[#allocation7 + $0x148] sm:$0xff] }
  0xa2   :  { %1177 = vmatprep.subr.bf16.mxu1 %v1176_v3  ;;  %v686_v3 = vld [vmem:[#allocation7 + $0x180] sm:$0xff]  ;;  %v1198_v6 = vpack.c.bf16 %v318_v0, %v314_v62  ;;  %v664_v62 = vld [vmem:[#allocation7 + $0xd0] sm:$0xff] }
  0xa3   :  { %v696_v0 = vld [vmem:[#allocation7 + $0x1d0] sm:$0xff] }
  0xa4   :  { %1051 = vmatpush1.bf16.msra.mxu0 %v1050_v9  ;;  %v639_v9 = vld [vmem:[#allocation7 + $0x8] sm:$0xff] }
  0xa5   :  { %1179 = vmatpush1.bf16.msra.mxu1 %v1178_v10  ;;  %1053 = vmatprep.subr.bf16.mxu0 %v1052_v11  ;;  %v670_v10 = vld [vmem:[#allocation7 + $0x100] sm:$0xff]  ;;  %v1232_v11 = vpack.c.bf16 %v687_v4, %v686_v3  ;;  %v1202_v18 = vpack.c.bf16 %v639_v9, %v638_v8  ;;  %v680_v8 = vld [vmem:[#allocation7 + $0x150] sm:$0xff]  ;;  %v681_v9 = vld [vmem:[#allocation7 + $0x158] sm:$0xff] }
  0xa6   :  { %1181 = vmatprep.subr.bf16.mxu1 %v1180_v15  ;;  %v688_v15 = vld [vmem:[#allocation7 + $0x190] sm:$0xff]  ;;  %v1234_v19 = vpack.c.bf16 %v671_v12, %v670_v10  ;;  %v666_v12 = vld [vmem:[#allocation7 + $0xe0] sm:$0xff] }
  0xa7   :  { %v1236_v24 = vpack.c.bf16 %v689_v16, %v688_v15  ;;  %v1224_v15 = vpack.c.bf16 %v667_v13, %v666_v12  ;;  %v699_v16 = vld [vmem:[#allocation7 + $0x1e8] sm:$0xff] }
  0xa8   :  { %1055 = vmatpush1.bf16.msra.mxu0 %v1054_v21  ;;  %v640_v21 = vld [vmem:[#allocation7 + $0x10] sm:$0xff] }
  0xa9   :  { %1183 = vmatpush1.bf16.msra.mxu1 %v1182_v22  ;;  %1057 = vmatprep.subr.bf16.mxu0 %v1056_v23  ;;  %v641_v22 = vld [vmem:[#allocation7 + $0x18] sm:$0xff]  ;;  %v672_v23 = vld [vmem:[#allocation7 + $0x110] sm:$0xff] }
  0xaa   :  { %1185 = vmatprep.subr.bf16.mxu1 %v1184_v27  ;;  %v659_v27 = vld [vmem:[#allocation7 + $0xa8] sm:$0xff]  ;;  %v1206_v30 = vpack.c.bf16 %v641_v22, %v640_v21  ;;  %v1238_v31 = vpack.c.bf16 %v673_v25, %v672_v23  ;;  %v682_v21 = vld [vmem:[#allocation7 + $0x160] sm:$0xff]  ;;  %v669_v25 = vld [vmem:[#allocation7 + $0xf8] sm:$0xff] }
  0xab   :  { %v1208_v32 = vpack.c.bf16 %v659_v27, %v658_v26  ;;  %v683_v22 = vld [vmem:[#allocation7 + $0x168] sm:$0xff]  ;;  %v700_v26 = vld [vmem:[#allocation7 + $0x1f0] sm:$0xff] }
  0xac   :  { %1059 = vmatpush1.bf16.msra.mxu0 %v1058_v33  ;;  %v642_v33 = vld [vmem:[#allocation7 + $0x20] sm:$0xff]  ;;  %v1258_v23 = vpack.c.bf16 %v683_v22, %v682_v21 }
  0xad   :  { %1187 = vmatpush1.bf16.msra.mxu1 %v1186_v34  ;;  %1061 = vmatprep.subr.bf16.mxu0 %v1060_v35  ;;  %v643_v34 = vld [vmem:[#allocation7 + $0x28] sm:$0xff]  ;;  %v674_v35 = vld [vmem:[#allocation7 + $0x120] sm:$0xff] }
  0xae   :  { %1189 = vmatprep.subr.bf16.mxu1 %v1188_v39  ;;  %v661_v39 = vld [vmem:[#allocation7 + $0xb8] sm:$0xff]  ;;  %v1210_v42 = vpack.c.bf16 %v643_v34, %v642_v33  ;;  %v1242_v43 = vpack.c.bf16 %v675_v37, %v674_v35  ;;  %v684_v33 = vld [vmem:[#allocation7 + $0x170] sm:$0xff] }
  0xaf   :  { %v1212_v44 = vpack.c.bf16 %v661_v39, %v660_v38  ;;  %v685_v34 = vld [vmem:[#allocation7 + $0x178] sm:$0xff]  ;;  %v320_v39 = vld [vmem:[%s1472_s2] sm:$0xf] }
  0xb0   :  { %1063 = vmatpush1.bf16.msra.mxu0 %v1062_v45  ;;  %v644_v45 = vld [vmem:[#allocation7 + $0x30] sm:$0xff]  ;;  %v1262_v35 = vpack.c.bf16 %v685_v34, %v684_v33 }
  0xb1   :  { %1191 = vmatpush1.bf16.msra.mxu1 %v1190_v46  ;;  %1065 = vmatprep.subr.bf16.mxu0 %v1064_v47  ;;  %v645_v46 = vld [vmem:[#allocation7 + $0x38] sm:$0xff]  ;;  %v676_v47 = vld [vmem:[#allocation7 + $0x130] sm:$0xff] }
  0xb2   :  { %1193 = vmatprep.subr.bf16.mxu1 %v1192_v51  ;;  %v663_v51 = vld [vmem:[#allocation7 + $0xc8] sm:$0xff]  ;;  %v1214_v54 = vpack.c.bf16 %v645_v46, %v644_v45  ;;  %v1246_v55 = vpack.c.bf16 %v677_v49, %v676_v47 }
  0xb3   :  { %v1216_v56 = vpack.c.bf16 %v663_v51, %v662_v50 }
  0xb4   :  { %1067 = vmatpush1.bf16.msra.mxu0 %v1066_v57  ;;  %v646_v57 = vld [vmem:[#allocation7 + $0x40] sm:$0xff] }
  0xb5   :  { %1195 = vmatpush1.bf16.msra.mxu1 %v1194_v58  ;;  %1069 = vmatprep.subr.bf16.mxu0 %v1068_v59  ;;  %v647_v58 = vld [vmem:[#allocation7 + $0x48] sm:$0xff]  ;;  %v678_v59 = vld [vmem:[#allocation7 + $0x140] sm:$0xff] }
  0xb6   :  { %1197 = vmatprep.subr.bf16.mxu1 %v1196_v63  ;;  %v665_v63 = vld [vmem:[#allocation7 + $0xd8] sm:$0xff]  ;;  %v1218_v2 = vpack.c.bf16 %v647_v58, %v646_v57  ;;  %v1250_v3 = vpack.c.bf16 %v679_v61, %v678_v59 }
  0xb7   :  { %v1220_v4 = vpack.c.bf16 %v665_v63, %v664_v62 }
  0xb8   :  { %1071 = vmatpush1.bf16.msra.mxu0 %v1070_v5  ;;  %v648_v5 = vld [vmem:[#allocation7 + $0x50] sm:$0xff] }
  0xb9   :  { %1199 = vmatpush1.bf16.msra.mxu1 %v1198_v6  ;;  %1201 = vmatprep.subr.bf16.mxu0 %v1200_v7  ;;  %v649_v6 = vld [vmem:[#allocation7 + $0x58] sm:$0xff]  ;;  %v1252_v7 = vpack.c.bf16 %v697_v1, %v696_v0  ;;  %v872_v1 = vld [vmem:[%s1474_s4] ss:$0 sm:$0xff] }
  0xba   :  { %1233 = vmatprep.subr.bf16.mxu1 %v1232_v11  ;;  %v1222_v10 = vpack.c.bf16 %v649_v6, %v648_v5  ;;  %v1254_v11 = vpack.c.bf16 %v681_v9, %v680_v8 }
  0xbb   :  { %478 = vmatmul.mubr.f32.vlgmr.msra.gmra.mrb[0].mxu0 %v62_v17 }
  0xbc   :  { %620 = vmatmul.mubr.f32.vlgmr.msra.gmra.mrb[0].mxu1 %v62_v17  ;;  %1203 = vmatpush3.bf16.msra.mxu0 %v1202_v18  ;;  %v650_v17 = vld [vmem:[#allocation7 + $0x60] sm:$0xff]  ;;  %v651_v18 = vld [vmem:[#allocation7 + $0x68] sm:$0xff] }
  0xbd   :  { %1235 = vmatpush3.bf16.msra.mxu1 %v1234_v19  ;;  %1205 = vmatprep.subr.bf16.mxu0 %v1204_v20  ;;  %v1256_v19 = vpack.c.bf16 %v699_v16, %v698_v14  ;;  %v1226_v20 = vpack.c.bf16 %v651_v18, %v650_v17 }
  0xbe   :  { %1237 = vmatprep.subr.bf16.mxu1 %v1236_v24  ;;  %v668_v24 = vld [vmem:[#allocation7 + $0xf0] sm:$0xff] }
  0xbf   :  { %v1228_v27 = vpack.c.bf16 %v669_v25, %v668_v24 }
  0xc0   :  { %1207 = vmatpush3.bf16.msra.mxu0 %v1206_v30  ;;  %v653_v30 = vld [vmem:[#allocation7 + $0x78] sm:$0xff] }
  0xc1   :  { %1239 = vmatpush3.bf16.msra.mxu1 %v1238_v31  ;;  %1209 = vmatprep.subr.bf16.mxu0 %v1208_v32  ;;  %v1260_v31 = vpack.c.bf16 %v701_v28, %v700_v26  ;;  %v1230_v32 = vpack.c.bf16 %v653_v30, %v652_v29 }
  0xc2   :  { %1241 = vmatprep.subr.bf16.mxu1 %v1240_v36  ;;  %v322_v36 = vlaneseq }
  0xc4   :  { %1211 = vmatpush3.bf16.msra.mxu0 %v1210_v42  ;;  %v323_v37 = vshrl.u32 %v322_v36, 7 }
  0xc5   :  { %1243 = vmatpush3.bf16.msra.mxu1 %v1242_v43  ;;  %1213 = vmatprep.subr.bf16.mxu0 %v1212_v44 }
  0xc6   :  { %1245 = vmatprep.subr.bf16.mxu1 %v1244_v48  ;;  %v324_v38 = vsub.s32 0, %v323_v37  ;;  %v332_v40 = vsub.s32 2, %v323_v37  ;;  %v328_v41 = vsub.s32 1, %v323_v37  ;;  %v336_v42 = vsub.s32 3, %v323_v37 }
  0xc8   :  { %1215 = vmatpush3.bf16.msra.mxu0 %v1214_v54  ;;  %v325_v43 = vrot.slane %v320_v39, %v324_v38  ;;  %v333_v44 = vrot.slane %v320_v39, %v332_v40  ;;  %v329_v45 = vrot.slane %v320_v39, %v328_v41  ;;  %v337_v46 = vrot.slane %v320_v39, %v336_v42 }
  0xc9   :  { %1247 = vmatpush3.bf16.msra.mxu1 %v1246_v55  ;;  %1217 = vmatprep.subr.bf16.mxu0 %v1216_v56 }
  0xca   :  { %1249 = vmatprep.subr.bf16.mxu1 %v1248_v60 }
  0xcc   :  { %1219 = vmatpush3.bf16.msra.mxu0 %v1218_v2 }
  0xcd   :  { %1251 = vmatpush3.bf16.msra.mxu1 %v1250_v3  ;;  %1221 = vmatprep.subr.bf16.mxu0 %v1220_v4 }
  0xce   :  { %1253 = vmatprep.subr.bf16.mxu1 %v1252_v7 }
  0xd0   :  { %1223 = vmatpush3.bf16.msra.mxu0 %v1222_v10 }
  0xd1   :  { %1255 = vmatpush3.bf16.msra.mxu1 %v1254_v11  ;;  %1225 = vmatprep.subr.bf16.mxu0 %v1224_v15 }
  0xd2   :  { %1257 = vmatprep.subr.bf16.mxu1 %v1256_v19 }
  0xd4   :  { %1227 = vmatpush3.bf16.msra.mxu0 %v1226_v20 }
  0xd5   :  { %1259 = vmatpush3.bf16.msra.mxu1 %v1258_v23  ;;  %1229 = vmatprep.subr.bf16.mxu0 %v1228_v27 }
  0xd6   :  { %1261 = vmatprep.subr.bf16.mxu1 %v1260_v31 }
  0xd8   :  { %1231 = vmatpush3.bf16.msra.mxu0 %v1230_v32 }
  0xd9   :  { %1263 = vmatpush3.bf16.msra.mxu1 %v1262_v35 }
 0x18e   :  { %v479_v47 = vpop.f32.mrb[0].mxu0 }
 0x18f   :  { %v1264_v48 = vadd.f32 %v479_v47, %v325_v43  ;;  %v621_v49 = vpop.f32.mrb[0].mxu1  ;;  %v481_v50 = vpop.f32.mrb[1].mxu0 }
 0x190   :  { %v1266_v51 = vadd.f32 %v621_v49, %v333_v44  ;;  %v1265_v52 = vadd.f32 %v481_v50, %v329_v45  ;;  %v623_v53 = vpop.f32.mrb[1].mxu1 }
 0x191   :  { %v630_v54 = vmul.f32 0.01, %v1264_v48  ;;  %v1267_v55 = vadd.f32 %v623_v53, %v337_v46  ;;  %vm626_vm0 = vcmp.gt.f32.partialorder %v1264_v48, 0.0 }
 0x192   :  { %v632_v56 = vmul.f32 0.01, %v1266_v51  ;;  %v631_v57 = vmul.f32 0.01, %v1265_v52  ;;  %vm627_vm1 = vcmp.gt.f32.partialorder %v1265_v52, 0.0  ;;  %vm628_vm2 = vcmp.gt.f32.partialorder %v1266_v51, 0.0 }
 0x193   :  { %v633_v58 = vmul.f32 0.01, %v1267_v55  ;;  %vm629_vm3 = vcmp.gt.f32.partialorder %v1267_v55, 0.0  ;;  %v634_v61 = vsel %vm626_vm0, %v1264_v48, %v630_v54 }
 0x194   :  { %v635_v59 = vsel %vm627_vm1, %v1265_v52, %v631_v57  ;;  %v636_v62 = vsel %vm628_vm2, %v1266_v51, %v632_v56 }
 0x195   :  { %773 = vmatprep.mubr.f32.mxu0 %v635_v59  ;;  %v637_v60 = vsel %vm629_vm3, %v1267_v55, %v633_v58 }
 0x196   :  { %843 = vmatprep.mubr.f32.mxu1 %v637_v60  ;;  %774 = vmatmul.mubr.f32.vlgmr.msra.gmra.mrb[2].mxu0 %v634_v61 }
 0x197   :  { %844 = vmatmul.mubr.f32.vlgmr.msra.gmra.mrb[2].mxu1 %v636_v62 }
 0x269   :  { %v906_v63 = vpop.f32.mrb[2].mxu0 }
 0x26a   :  { %v941_v0 = vpop.f32.mrb[2].mxu1  ;;  %v907_v2 = vpop.f32.mrb[3].mxu0 }
 0x26b   :  { %v908_v3 = vadd.f32 %v907_v2, %v906_v63  ;;  %v942_v4 = vpop.f32.mrb[3].mxu1 }
 0x26c   :  { %v943_v5 = vadd.f32 %v942_v4, %v941_v0 }
 0x26d   :  { %v776_v6 = vadd.f32 %v908_v3, %v872_v1 }
 0x26f   :  { %v846_v7 = vadd.f32 %v943_v5, %v776_v6 }
 0x271   :  { %v873_v8 = vmul.f32 -1.442695, %v846_v7 }
 0x273   :  { %1280 = vpow2.f32 %v873_v8 }
 0x27d   :  { %v1281_v9 = vpop.eup %1280 }
 0x27e   :  { %v852_v10 = vadd.f32 1.0, %v1281_v9 }
 0x280   :  { %1282 = vrcp.f32 %v852_v10 }
 0x28a   :  { %v1283_v11 = vpop.eup %1282 }
 0x28b   :  { %855 = vst [vmem:[#allocation8] sm:$0xff] %v1283_v11 }
 0x28c   :  { %1361 = shalt.err (!%p1358_p0)
}
 0x28d   :  { %s1362_s12 = scalar_lea.hbm %s1475_s5, 128 }
 0x28e   :  { %p1363_p1 = scmp.ne.s32.totalorder %s1475_s5, %s1362_s12  ;;  %p1366_p2 = scmp.lt.u32.totalorder %s1362_s12, %s1475_s5 }
 0x290   :  { %p1368_p3 = pnand %p1366_p2, %p1363_p1 }
 0x292   :  { %1371 = shalt.err (!%p1368_p3)
}
 0x293   :  { %865 = dma.vmem_to_hbm [thread:$0]  %s863_s9, 128, %s1475_s5, [#allocation4]  }
 0x294   :  { %1376 = dma.done.wait [#allocation4], 128  }
 0x295   :  { %1377 = vsyncadd [#allocation4], 4294967168 }
 0x296   :  { %869 = vsyncpa [#allocation3], 1 }
 0x297   :  { %870 = vsyncpa [#allocation6], 1 }
 0x298   :  { %871 = vsyncpa [#allocation4], 1 }

</bundles_post_ra>
